<compile_context>
chip_gen: v7x
topology: tpu7x:2x2x1
jax: 0.10.0
libtpu: 0.0.40
codegen_flags: <defaults>
</compile_context>

<pallas_src>
import functools

import jax
import jax.numpy as jnp
from jax.experimental import pallas as pl
from jax.experimental.pallas import tpu as pltpu


def _supcon_kernel(logits_ref, mask_ref, out_ref, *, batch: int):
    tb = logits_ref.shape[0]

    logits = logits_ref[...].astype(jnp.float32)            # (tb, N)
    mask = mask_ref[...].astype(jnp.float32)                 # (tb, N)

    # ---- pass 1: per-row statistics (XLU/VPU; hidden under the input DMA) ----
    row_max = jnp.max(logits, axis=1, keepdims=True)          # (tb, 1)
    den = jnp.sum(mask, axis=1, keepdims=True)                 # (tb, 1)
    sum_ml = jnp.sum(mask * logits, axis=1, keepdims=True)     # (tb, 1); mask retires here

    # ---- pass 2: log-sum-exp denominator; exp fused into the reduction ----
    sum_exp = jnp.sum(jnp.exp(logits - row_max), axis=1, keepdims=True)  # (tb, 1)
    log_denom = jnp.log(sum_exp)                               # (tb, 1)

    # sum(mask * log_prob) = sum(mask*logits) - (row_max + log(sum_exp)) * sum(mask)
    num = sum_ml - (row_max + log_denom) * den                 # (tb, 1)

    # -mean_log_prob_pos per row.  Rows with zero positives give 0 * inf = NaN,
    # which matches the PyTorch module.  approx reciprocal runs on the EUP slot.
    per_row = -(num * pl.reciprocal(den, approx=True))         # (tb, 1)

    # Ragged last block: rows past the true batch hold undefined VMEM data
    # (possibly inf/NaN after exp) -- zero them so they never propagate.
    row_ids = jax.lax.broadcasted_iota(jnp.int32, (tb, 1), 0) + pl.program_id(0) * tb
    per_row = jnp.where(row_ids < batch, per_row, 0.0)

    # One partial sum per block, stored as a single unmasked lane-dense vreg.
    partial = jnp.sum(per_row, axis=0, keepdims=True)           # (1, 1)
    out_ref[0] = jnp.broadcast_to(partial, (8, 128))


def _min_sublane(dt) -> int:
    # Sublane-tiling multiple for the block's second-minor dim: 8 for 4-byte,
    # 16 for 2-byte (bf16), 32 for 1-byte (int8 / bool) inputs.
    return max(8, 32 // max(1, jnp.dtype(dt).itemsize))


def supcon_loss(logits: jax.Array, mask: jax.Array, *,
                block_rows: int | None = None,
                vmem_fraction: float = 0.75) -> jax.Array:
    """Pallas SupConLoss. logits/mask: [B, N] (any float / int / bool dtypes);
    returns scalar f32 loss identical to the PyTorch module's forward."""
    assert logits.shape == mask.shape and logits.ndim == 2
    B, N = logits.shape

    cdiv = lambda a, b: -(-a // b)
    align_up = lambda v, a: cdiv(v, a) * a

    align = max(_min_sublane(logits.dtype), _min_sublane(mask.dtype))
    in_bytes_per_row = N * (jnp.dtype(logits.dtype).itemsize +
                            jnp.dtype(mask.dtype).itemsize)
    # Per-row VMEM: double-buffered input blocks + ~3 live full-width f32
    # intermediates (upcast logits, upcast mask, fused exp stream).
    vmem_per_row = 2 * in_bytes_per_row + 3 * N * 4

    # Generation-aware VMEM budget (v7x: 64 MiB/TC, v5e/v6e: 128 MiB).
    try:
        vmem_cap = int(pltpu.get_tpu_info().vmem_capacity_bytes)
    except Exception:
        vmem_cap = 64 * 1024 * 1024
    vmem_budget = int(vmem_cap * vmem_fraction)
    vmem_budget = max(32 * 1024 * 1024, min(vmem_budget, 100 * 1024 * 1024))
    tb_vmem_cap = max(align, (vmem_budget // vmem_per_row) // align * align)

    if block_rows is not None:
        tb = align_up(block_rows, align)
    else:
        # ~8 grid steps (pipelining depth, feeds both v7x TCs) ...
        tb = align_up(cdiv(B, 8), align)
        # ... but grow toward >= 4 MiB of input per step to amortize the
        # ~0.35us/step overhead, never dropping below 2 steps.
        rows_4mib = cdiv(4 * 1024 * 1024, in_bytes_per_row)
        if tb < rows_4mib:
            tb = min(align_up(rows_4mib, align), align_up(cdiv(B, 2), align))
    tb = min(tb, tb_vmem_cap, align_up(B, align))
    tb = max(tb, align)

    grid_b = cdiv(B, tb)   # NO padding: the ragged last block is masked in-kernel

    out = pl.pallas_call(
        functools.partial(_supcon_kernel, batch=B),
        out_shape=jax.ShapeDtypeStruct((grid_b, 8, 128), jnp.float32),
        grid_spec=pltpu.PrefetchScalarGridSpec(
            num_scalar_prefetch=0,
            grid=(grid_b,),
            in_specs=[
                pl.BlockSpec((tb, N), lambda i: (i, 0)),
                pl.BlockSpec((tb, N), lambda i: (i, 0)),
            ],
            out_specs=pl.BlockSpec((1, 8, 128), lambda i: (i, 0, 0)),
        ),
        compiler_params=pltpu.CompilerParams(
            dimension_semantics=("parallel",),      # disjoint outputs -> megacore-shardable
            vmem_limit_bytes=vmem_budget,
        ),
        cost_estimate=pl.CostEstimate(
            flops=5 * B * N,
            transcendentals=B * N + B,
            bytes_accessed=B * in_bytes_per_row + grid_b * 8 * 128 * 4,
        ),
    )(logits, mask)

    # Tiny final reduction in plain JAX (negligible vs. the 2*B*N input read).
    return jnp.sum(out[:, 0, 0]) / B


def _supcon_loss_ref(logits, mask):
    # Pure-JAX reference mirroring the PyTorch forward (f32).
    logits = logits.astype(jnp.float32)
    mask = mask.astype(jnp.float32)
    row_max = jnp.max(logits, axis=1, keepdims=True)
    shifted = logits - row_max
    log_prob = shifted - jnp.log(jnp.sum(jnp.exp(shifted), axis=1, keepdims=True))
    mean_log_prob_pos = jnp.sum(mask * log_prob, axis=1) / jnp.sum(mask, axis=1)
    return jnp.mean(-mean_log_prob_pos)


if __name__ == "__main__":
    key = jax.random.PRNGKey(0)
    k1, k2 = jax.random.split(key)

    # B=200 is deliberately not a multiple of the tile so the in-kernel ragged
    # masking path is exercised; N=384 is lane-dense (3 x 128).
    B, N = 200, 384
    logits = jax.random.normal(k1, (B, N), dtype=jnp.float32) * 3.0

    # Binary positive mask with at least one positive per row (valid SupCon usage).
    mask = (jax.random.uniform(k2, (B, N)) < 0.3).astype(jnp.float32)
    mask = mask.at[jnp.arange(B), jnp.arange(B)].set(1.0)

    ref = _supcon_loss_ref(logits, mask)

    # 1) forced small tile -> 4-step grid with a ragged (partially valid) last block
    loss = supcon_loss(logits, mask, block_rows=64)
    jax.block_until_ready(loss)
    assert jnp.allclose(loss, ref, rtol=5e-3, atol=5e-3), (loss, ref)

    # 2) default auto-sized tiles (generation-aware VMEM / step sizing, no padding)
    loss_auto = supcon_loss(logits, mask)
    jax.block_until_ready(loss_auto)
    assert jnp.allclose(loss_auto, ref, rtol=5e-3, atol=5e-3), (loss_auto, ref)

    # 3) narrow-dtype path: bf16 logits + int8 mask (~2.4x less HBM read traffic)
    logits_bf16 = logits.astype(jnp.bfloat16)
    mask_i8 = mask.astype(jnp.int8)
    loss_narrow = supcon_loss(logits_bf16, mask_i8, block_rows=64)
    jax.block_until_ready(loss_narrow)
    ref_narrow = _supcon_loss_ref(logits_bf16, mask_i8)
    assert jnp.allclose(loss_narrow, ref_narrow, rtol=5e-3, atol=5e-3), (loss_narrow, ref_narrow)

    print("KERNEL_OK")
</pallas_src>

<mosaic_0001>
module attributes {stable_mosaic.version = 11 : i64} {
  func.func @_supcon_kernel(%arg0: i32, %arg1: memref<64x384xf32, #tpu.memory_space<vmem>>, %arg2: memref<64x384xf32, #tpu.memory_space<vmem>>, %arg3: memref<1x8x128xf32, #tpu.memory_space<vmem>>) attributes {dimension_semantics = [#tpu.dimension_semantics<parallel>], iteration_bounds = array<i64: 4>, scalar_prefetch = 0 : i64, scratch_operands = 0 : i64, tpu.core_type = #tpu.core_type<tc>, window_params = [{transform_indices = @transform_0, window_bounds = array<i64: 64, 384>}, {transform_indices = @transform_1, window_bounds = array<i64: 64, 384>}, {transform_indices = @transform_2, window_bounds = array<i64: 1, 8, 128>}]} {
    %c0 = arith.constant 0 : index
    %c0_0 = arith.constant 0 : index
    %0 = vector.load %arg1[%c0, %c0_0] : memref<64x384xf32, #tpu.memory_space<vmem>>, vector<64x384xf32>
    %c0_1 = arith.constant 0 : index
    %c0_2 = arith.constant 0 : index
    %1 = vector.load %arg2[%c0_1, %c0_2] : memref<64x384xf32, #tpu.memory_space<vmem>>, vector<64x384xf32>
    %cst = arith.constant dense<0xFF800000> : vector<64xf32>
    %2 = vector.multi_reduction <maximumf>, %0, %cst [1] : vector<64x384xf32> to vector<64xf32>
    %3 = vector.shape_cast %2 : vector<64xf32> to vector<64x1xf32>
    %cst_3 = arith.constant dense<0.000000e+00> : vector<64xf32>
    %4 = vector.multi_reduction <add>, %1, %cst_3 [1] : vector<64x384xf32> to vector<64xf32>
    %5 = vector.shape_cast %4 : vector<64xf32> to vector<64x1xf32>
    %6 = arith.mulf %1, %0 : vector<64x384xf32>
    %cst_4 = arith.constant dense<0.000000e+00> : vector<64xf32>
    %7 = vector.multi_reduction <add>, %6, %cst_4 [1] : vector<64x384xf32> to vector<64xf32>
    %8 = vector.shape_cast %7 : vector<64xf32> to vector<64x1xf32>
    %9 = vector.broadcast %3 : vector<64x1xf32> to vector<64x384xf32>
    %10 = arith.subf %0, %9 : vector<64x384xf32>
    %11 = math.exp %10 : vector<64x384xf32>
    %cst_5 = arith.constant dense<0.000000e+00> : vector<64xf32>
    %12 = vector.multi_reduction <add>, %11, %cst_5 [1] : vector<64x384xf32> to vector<64xf32>
    %13 = vector.shape_cast %12 : vector<64xf32> to vector<64x1xf32>
    %14 = math.log %13 : vector<64x1xf32>
    %15 = arith.addf %3, %14 : vector<64x1xf32>
    %16 = arith.mulf %15, %5 : vector<64x1xf32>
    %17 = arith.subf %8, %16 : vector<64x1xf32>
    %18 = tpu.reciprocal %5 {approx = true} : vector<64x1xf32> -> vector<64x1xf32>
    %19 = arith.mulf %17, %18 : vector<64x1xf32>
    %cst_6 = arith.constant 0.000000e+00 : f32
    %20 = vector.broadcast %cst_6 : f32 to vector<64x1xf32>
    %21 = arith.subf %20, %19 : vector<64x1xf32>
    %22 = tpu.iota {dimensions = array<i32: 0>} : vector<64x1xi32>
    %c64_i32 = arith.constant 64 : i32
    %23 = arith.muli %arg0, %c64_i32 : i32
    %24 = vector.broadcast %23 : i32 to vector<64x1xi32>
    %25 = arith.addi %22, %24 : vector<64x1xi32>
    %c200_i32 = arith.constant 200 : i32
    %26 = vector.broadcast %c200_i32 : i32 to vector<64x1xi32>
    %27 = arith.cmpi slt, %25, %26 : vector<64x1xi32>
    %cst_7 = arith.constant 0.000000e+00 : f32
    %28 = vector.broadcast %cst_7 : f32 to vector<64x1xf32>
    %29 = arith.select %27, %21, %28 : vector<64x1xi1>, vector<64x1xf32>
    %cst_8 = arith.constant dense<0.000000e+00> : vector<1xf32>
    %30 = vector.multi_reduction <add>, %29, %cst_8 [0] : vector<64x1xf32> to vector<1xf32>
    %31 = vector.shape_cast %30 : vector<1xf32> to vector<1x1xf32>
    %32 = vector.shape_cast %31 : vector<1x1xf32> to vector<1x1xf32>
    %33 = vector.broadcast %32 : vector<1x1xf32> to vector<8x128xf32>
    %c0_9 = arith.constant 0 : index
    %c0_10 = arith.constant 0 : index
    %c0_11 = arith.constant 0 : index
    %34 = vector.load %arg3[%c0_9, %c0_10, %c0_11] : memref<1x8x128xf32, #tpu.memory_space<vmem>>, vector<1x8x128xf32>
    %35 = vector.shape_cast %34 : vector<1x8x128xf32> to vector<8x128xf32>
    %36 = vector.shape_cast %33 : vector<8x128xf32> to vector<1x8x128xf32>
    tpu.vector_store %arg3[%c0_9, %c0_10, %c0_11], %36 {strides = array<i32>} : memref<1x8x128xf32, #tpu.memory_space<vmem>>, vector<1x8x128xf32>,
    return
  }
  func.func @transform_0(%arg0: i32) -> (i32, i32) {
    %c0_i32 = arith.constant 0 : i32
    %c0_i32_0 = arith.constant 0 : i32
    return %arg0, %c0_i32 : i32, i32
  }
  func.func @transform_1(%arg0: i32) -> (i32, i32) {
    %c0_i32 = arith.constant 0 : i32
    %c0_i32_0 = arith.constant 0 : i32
    return %arg0, %c0_i32 : i32, i32
  }
  func.func @transform_2(%arg0: i32) -> (i32, i32, i32) {
    %c0_i32 = arith.constant 0 : i32
    %c0_i32_0 = arith.constant 0 : i32
    %c0_i32_1 = arith.constant 0 : i32
    return %arg0, %c0_i32, %c0_i32_0 : i32, i32, i32
  }
}

</mosaic_0001>

<bundles_post_ra>
// kernel: tpu_custom_call.1
= control target key start
LH: loop header
LB: loop body
LE: loop exit
PB: predicated region body
PF: predicated region fallthrough
CT: control target
= control target key end

     0   :  { %7 = vsyncpa [#allocation3], 0  ;;  %s1514_s0 = inlined_call_operand.hbm [shape: f32[200,384], index: 0, kind: input, shape index: {}]   ;;  %s1515_s1 = inlined_call_operand.hbm [shape: f32[200,384], index: 1, kind: input, shape index: {}]   ;;  %s1516_s2 = inlined_call_operand.hbm [shape: f32[4,8,128], index: 2, kind: output, shape index: {}]  }
   0x1   :  { %9 = vsyncpa [#allocation3 + $0x1], 0 }
   0x2   :  { %10 = vsyncpa [#allocation6], 0 }
   0x3   :  { %12 = vsyncpa [#allocation6 + $0x1], 0 }
   0x4   :  { %13 = vsyncpa [#allocation4], 0 }
   0x5   :  { %15 = vsyncpa [#allocation4 + $0x1], 0  ;;  %s1026_s9 = smov 0   ;;  %s1028_s10 = smov 0  }
   0x6   :  { %s1030_s11 = smov 0   ;;  %s1032_s12 = smov 0  }
   0x7 LB: > { %s1047_s13 = sadd.s32 4294967295, %s1002_s12   ;;  %s722_s14 = sadd.s32 4294967294, %s1002_s12   ;;  %s1002_s12 = sphi %s1032_s12, %s1527_s12   ;;  %s998_s11 = sphi %s1030_s11, %s1526_s11   ;;  %s994_s10 = sphi %s1028_s10, %s1525_s10   ;;  %s990_s9 = sphi %s1026_s9, %s1524_s9  }
   0x8   : > { %s1051_s15 = sadd.s32 1, %s1002_s12   ;;  %s28_s16 = sadd.s32 1, %s998_s11 }
   0x9   : > { %s25_s17 = ssub.s32 %s1002_s12, %s1051_s15  ;;  %p35_p0 = scmp.ne.s32.totalorder %s998_s11, %s994_s10 }
   0xa   : > { %p26_p1 = scmp.eq.s32.totalorder %s25_s17, 0  ;;  %p36_p2 = scmp.eq.s32.totalorder %s1002_s12, 0 }
   0xb   : > { %p41_p3 = scmp.ne.s32.totalorder %s994_s10, %s990_s9  ;;  %p42_p4 = scmp.eq.s32.totalorder %s1047_s13, 0 }
   0xc   : > { %s1063_s18 = scalar_select %p26_p1, %s998_s11, %s28_s16  }
   0xd   : > { %p1065_p5 = por %p36_p2, %p35_p0  ;;  %p1069_p6 = por %p42_p4, %p41_p3 }
   0xe   : > { %p91_p7 = scmp.eq.s32.totalorder %s1047_s13, 3  ;;  %p97_p8 = scmp.eq.s32.totalorder %s722_s14, 3 }
   0xf   : > { %p724_p11 = scmp.ge.s32.totalorder %s1002_s12, 4 }
  0x10   : > { %p1074_p9 = por %p91_p7, %p35_p0  ;;  %p1078_p10 = por %p97_p8, %p41_p3 }
  0x11   : > { %113 = sbr.rel (%p724_p11) target bundleno = 96 (0x60), region = 16 }
  0x12   : > { %s1520_s21 = scalar_select %p1074_p9, 1, 0 }
  0x13   : > { %s1521_s22 = scalar_select %p1078_p10, 1, 0 }
  0x18   : > { %116 = sbr.rel (!%p1065_p5) target bundleno = 60 (0x3c), region = 20  ;;  %s117_s23 = sand.u32 (%p1065_p5), 1, %s998_s11  }
  0x19   : > { %s725_s24 = sshll.u32 (%p1065_p5), %s1002_s12, 3  ;;  %s746_s25 = smul.u32 (%p1065_p5), 192, %s117_s23 }
  0x1a   : > { %s123_s26 = ssub.s32 (%p1065_p5), 25, %s725_s24  ;;  %s1090_s29 = scalar_lea.sflag (%p1065_p5), [#allocation3], %s117_s23 }
  0x1b   : > { %p124_p12 = scmp.lt.s32.totalorder (%p1065_p5), %s123_s26, 8  ;;  %s121_s30 = scalar_lea.vmem (%p1065_p5), [#allocation2], %s746_s25 }
  0x1f   : > { %s1529_s26 = smov (!%p124_p12, %s123_s26), 8 }
  0x20   : > { %s1087_s27 = smul.u32 384, %s1529_s26 }
  0x22   : > { %s129_s28 = ssub.s32 3072, %s1087_s27 }
  0x23   : > { %130 = vsyncadd %s1090_s29, %s129_s28  ;;  %p728_p13 = scmp.ne.s32.totalorder %s1087_s27, 0  ;;  %s747_s3 = smul.u32 3072, %s1002_s12 }
  0x24   : > { %s136_s4 = sshll.u32 %s121_s30, 4  ;;  %s880_s17 = scalar_lea.hbm %s1514_s0, 9600  ;;  %s1100_s4 = int_to_ptr.vmem [resolvable:$true] %s136_s4 }
  0x25   : > { %s1098_s7 = scalar_lea.hbm %s1514_s0, %s747_s3 }
  0x26   : > { %s876_s8 = scalar_lea.hbm %s1098_s7, %s1087_s27  ;;  %p881_p3 = scmp.lt.u32.totalorder %s1098_s7, %s1514_s0 }
  0x27   : > { %p877_p0 = scmp.ne.s32.totalorder %s1098_s7, %s876_s8  ;;  %p882_p4 = scmp.lt.u32.totalorder %s880_s17, %s876_s8 }
  0x28   : > { %p884_p8 = scmp.lt.u32.totalorder %s876_s8, %s1098_s7 }
  0x29   : > { %p878_p1 = pnand %p877_p0, %p728_p13  ;;  %p883_p7 = por %p882_p4, %p881_p3 }
  0x2b   : > { %p879_p2 = pneg %p878_p1  ;;  %p885_p11 = por %p884_p8, %p883_p7 }
  0x2d   : > { %p886_p12 = pnand %p885_p11, %p879_p2 }
  0x2f   : > { %889 = shalt.err (!%p886_p12)
}
  0x30   : > { %s890_s25 = scalar_lea.vmem %s1100_s4, %s1087_s27  ;;  %s1004_s26 = smov [#allocation2]  }
  0x31   : > { %p891_p0 = scmp.ne.s32.totalorder %s1100_s4, %s890_s25  ;;  %s894_s28 = sshll.u32 %s1004_s26, 4  ;;  %s895_s28 = int_to_ptr.vmem [resolvable:$false] %s894_s28 }
  0x32   : > { %s896_s30 = scalar_lea.vmem %s895_s28, 6144  ;;  %p897_p9 = scmp.lt.s32.totalorder %s1100_s4, %s895_s28 }
  0x33   : > { %p892_p1 = pnand %p891_p0, %p728_p13  ;;  %p898_p3 = scmp.lt.s32.totalorder %s896_s30, %s890_s25 }
  0x35   : > { %p893_p10 = pneg %p892_p1  ;;  %p899_p4 = por %p898_p3, %p897_p9 }
  0x37   : > { %p900_p7 = pnand %p899_p4, %p893_p10 }
  0x39   : > { %903 = shalt.err (!%p900_p7)
}
  0x3a   : > { %s1005_s3 = smov 384   ;;  %s1006_s5 = smov 24  }
  0x3b   : > { %142 = dma.hbm_to_vmem [thread:$0]  (%p728_p13), %s1098_s7, %s1087_s27, %s1100_s4, %s1090_s29, %s1005_s3, %s1005_s3, %s1006_s5  }
  0x3c PF: > { %145 = sbr.rel (!%p1065_p5) target bundleno = 96 (0x60), region = 24  ;;  %s146_s6 = sand.u32 (%p1065_p5), 1, %s998_s11  }
  0x3d   : > { %s732_s8 = sshll.u32 (%p1065_p5), %s1002_s12, 3  ;;  %s748_s14 = smul.u32 (%p1065_p5), 192, %s146_s6 }
  0x3e   : > { %s152_s16 = ssub.s32 (%p1065_p5), 25, %s732_s8  ;;  %s1134_s24 = scalar_lea.sflag (%p1065_p5), [#allocation6], %s146_s6 }
  0x3f   : > { %p153_p9 = scmp.lt.s32.totalorder (%p1065_p5), %s152_s16, 8  ;;  %s150_s27 = scalar_lea.vmem (%p1065_p5), [#allocation5], %s748_s14 }
  0x43   : > { %s1531_s16 = smov (!%p153_p9, %s152_s16), 8 }
  0x44   : > { %s1131_s17 = smul.u32 384, %s1531_s16 }
  0x46   : > { %s158_s23 = ssub.s32 3072, %s1131_s17 }
  0x47   : > { %159 = vsyncadd %s1134_s24, %s158_s23  ;;  %p735_p5 = scmp.ne.s32.totalorder %s1131_s17, 0  ;;  %s749_s19 = smul.u32 3072, %s1002_s12 }
  0x48   : > { %s165_s29 = sshll.u32 %s150_s27, 4  ;;  %s908_s3 = scalar_lea.hbm %s1515_s1, 9600  ;;  %s1144_s29 = int_to_ptr.vmem [resolvable:$true] %s165_s29 }
  0x49   : > { %s1142_s25 = scalar_lea.hbm %s1515_s1, %s749_s19 }
  0x4a   : > { %s904_s26 = scalar_lea.hbm %s1142_s25, %s1131_s17  ;;  %p909_p8 = scmp.lt.u32.totalorder %s1142_s25, %s1515_s1 }
  0x4b   : > { %p905_p10 = scmp.ne.s32.totalorder %s1142_s25, %s904_s26  ;;  %p910_p11 = scmp.lt.u32.totalorder %s908_s3, %s904_s26 }
  0x4c   : > { %p912_p0 = scmp.lt.u32.totalorder %s904_s26, %s1142_s25 }
  0x4d   : > { %p906_p13 = pnand %p905_p10, %p735_p5  ;;  %p911_p12 = por %p910_p11, %p909_p8 }
  0x4f   : > { %p907_p2 = pneg %p906_p13  ;;  %p913_p1 = por %p912_p0, %p911_p12 }
  0x51   : > { %p914_p3 = pnand %p913_p1, %p907_p2 }
  0x53   : > { %917 = shalt.err (!%p914_p3)
}
  0x54   : > { %s918_s8 = scalar_lea.vmem %s1144_s29, %s1131_s17  ;;  %s1007_s14 = smov [#allocation5]  }
  0x55   : > { %p919_p4 = scmp.ne.s32.totalorder %s1144_s29, %s918_s8  ;;  %s922_s16 = sshll.u32 %s1007_s14, 4  ;;  %s923_s16 = int_to_ptr.vmem [resolvable:$false] %s922_s16 }
  0x56   : > { %s924_s23 = scalar_lea.vmem %s923_s16, 6144  ;;  %p925_p10 = scmp.lt.s32.totalorder %s1144_s29, %s923_s16 }
  0x57   : > { %p920_p7 = pnand %p919_p4, %p735_p5  ;;  %p926_p13 = scmp.lt.s32.totalorder %s924_s23, %s918_s8 }
  0x59   : > { %p921_p9 = pneg %p920_p7  ;;  %p927_p8 = por %p926_p13, %p925_p10 }
  0x5b   : > { %p928_p11 = pnand %p927_p8, %p921_p9 }
  0x5d   : > { %931 = shalt.err (!%p928_p11)
}
  0x5e   : > { %s1008_s27 = smov 384   ;;  %s1009_s19 = smov 24  }
  0x5f   : > { %171 = dma.hbm_to_vmem [thread:$0]  (%p735_p5), %s1142_s25, %s1131_s17, %s1144_s29, %s1134_s24, %s1008_s27, %s1008_s27, %s1009_s19  }
  0x60 PF: > { %p739_p2 = scmp.ge.s32.totalorder %s1002_s12, 1  ;;  %p173_p12 = scmp.lt.s32.totalorder %s1002_s12, 5 }
  0x62   : > { %p174_p0 = pnand %p739_p2, %p173_p12 }
  0x63   : > { %s1174_s4 = sand.u32 (!%p174_p0), 1, %s994_s10  }
  0x64   : > { %177 = sbr.rel (%p174_p0) target bundleno = 500 (0x1f4), region = 28  ;;  %s180_s26 = scalar_lea.sflag (!%p174_p0), [#allocation3], %s1174_s4 }
  0x65   : > { %s750_s7 = smul.u32 (!%p174_p0), 192, %s1174_s4 }
  0x67   : > { %s1178_s28 = scalar_lea.vmem (!%p174_p0), [#allocation2], %s750_s7 }
  0x6b   : > { %977 = dma.done.wait (%p1069_p6), %s180_s26, 3072  }
  0x6c   : > { %979 = vsyncadd (%p1069_p6), %s180_s26, 4294964224  ;;  %s189_s17 = scalar_lea.sflag [#allocation6], %s1174_s4  ;;  %s1185_s24 = scalar_lea.vmem [#allocation5], %s750_s7 }
  0x6d   : > { %981 = dma.done.wait (%p1069_p6), %s189_s17, 3072  }
  0x6e   : > { %983 = vsyncadd (%p1069_p6), %s189_s17, 4294964224  ;;  %v1192_v0 = vld [vmem:[%s1178_s28] sm:$0xff]  ;;  %v1195_v1 = vld [vmem:[%s1178_s28 + $0x8] sm:$0xff]  ;;  %s741_s20 = sshll.u32 %s1047_s13, 6  ;;  %s740_s29 = sshll.u32 %s1174_s4, 3 }
  0x6f   : > { %v1198_v2 = vld [vmem:[%s1178_s28 + $0x10] sm:$0xff]  ;;  %v278_v3 = vmax.f32 %v1192_v0, %v1195_v1  ;;  %v1206_v5 = vld [vmem:[%s1178_s28 + $0x38] sm:$0xff]  ;;  %v1209_v6 = vld [vmem:[%s1178_s28 + $0x40] sm:$0xff]  ;;  %s743_s25 = sshll.u32 %s1047_s13, 7  ;;  %s217_s30 = scalar_lea.vmem [#allocation7], %s740_s29 }
  0x70   : > { %v1203_v4 = vld [vmem:[%s1178_s28 + $0x30] sm:$0xff]  ;;  %v1214_v8 = vld [vmem:[%s1178_s28 + $0x18] sm:$0xff]  ;;  %v1217_v9 = vld [vmem:[%s1178_s28 + $0x20] sm:$0xff]  ;;  %s629_s3 = sshll.u32 %s217_s30, 4  ;;  %s1471_s8 = scalar_lea.hbm %s1516_s2, %s743_s25  ;;  %s1473_s3 = int_to_ptr.vmem [resolvable:$true] %s629_s3 }
  0x71   : > { %v286_v7 = vmax.f32 %v1203_v4, %v1206_v5  ;;  %v1220_v10 = vld [vmem:[%s1178_s28 + $0x28] sm:$0xff]  ;;  %v279_v11 = vmax.f32 %v278_v3, %v1198_v2  ;;  %v282_v12 = vmax.f32 %v1214_v8, %v1217_v9  ;;  %v1229_v14 = vld [vmem:[%s1178_s28 + $0x50] sm:$0xff]  ;;  %v1232_v15 = vld [vmem:[%s1178_s28 + $0x58] sm:$0xff]  ;;  %s616_s14 = scalar_lea.sflag [#allocation4], %s1174_s4  ;;  %s932_s16 = scalar_lea.vmem %s1473_s3, 128 }
  0x72   : > { %v1226_v13 = vld [vmem:[%s1178_s28 + $0x48] sm:$0xff]  ;;  %v1238_v18 = vld [vmem:[%s1178_s28 + $0x60] sm:$0xff]  ;;  %v1247_v22 = vld [vmem:[%s1178_s28 + $0x78] sm:$0xff]  ;;  %p933_p6 = scmp.ne.s32.totalorder %s1473_s3, %s932_s16  ;;  %p1522_p5 = scmp.ne.s32.totalorder %s1520_s21, 0 }
  0x73   : > { %v287_v16 = vmax.f32 %v286_v7, %v1209_v6  ;;  %v290_v17 = vmax.f32 %v1226_v13, %v1229_v14  ;;  %v1241_v19 = vld [vmem:[%s1178_s28 + $0x68] sm:$0xff]  ;;  %280 = vmax.xlane.f32.xlu0 %v279_v11  ;;  %v283_v20 = vmax.f32 %v282_v12, %v1220_v10  ;;  %v1250_v23 = vld [vmem:[%s1178_s28 + $0x80] sm:$0xff]  ;;  %v1254_v25 = vld [vmem:[%s1178_s28 + $0x70] sm:$0xff]  ;;  %s1010_s13 = smov [#allocation7]  }
  0x74   : > { %v294_v21 = vmax.f32 %v1238_v18, %v1241_v19  ;;  %v298_v26 = vmax.f32 %v1247_v22, %v1250_v23  ;;  %v1259_v27 = vld [vmem:[%s1178_s28 + $0x90] sm:$0xff]  ;;  %v1262_v28 = vld [vmem:[%s1178_s28 + $0x98] sm:$0xff]  ;;  %v1265_v29 = vld [vmem:[%s1178_s28 + $0x88] sm:$0xff]  ;;  %p934_p1 = pnand %p933_p6, %p1522_p5  ;;  %s936_s23 = sshll.u32 %s1010_s13, 4  ;;  %s937_s23 = int_to_ptr.vmem [resolvable:$false] %s936_s23 }
  0x75   : > { %288 = vmax.xlane.f32.xlu1 %v287_v16  ;;  %v291_v24 = vmax.f32 %v290_v17, %v1232_v15  ;;  %v1268_v30 = vld [vmem:[%s1178_s28 + $0xa8] sm:$0xff]  ;;  %v1271_v31 = vld [vmem:[%s1178_s28 + $0xb0] sm:$0xff]  ;;  %v302_v33 = vmax.f32 %v1259_v27, %v1262_v28  ;;  %v1278_v35 = vld [vmem:[%s1178_s28 + $0xa0] sm:$0xff]  ;;  %s938_s27 = scalar_lea.vmem %s937_s23, 256  ;;  %p939_p4 = scmp.lt.s32.totalorder %s1473_s3, %s937_s23 }
  0x76   : > { %v295_v32 = vmax.f32 %v294_v21, %v1254_v25  ;;  %v299_v34 = vmax.f32 %v298_v26, %v1265_v29  ;;  %v306_v36 = vmax.f32 %v1268_v30, %v1271_v31  ;;  %v1283_v37 = vld [vmem:[%s1178_s28 + $0xb8] sm:$0xff]  ;;  %v258_v41 = vld [vmem:[%s1185_s24 + $0x20] sm:$0xff]  ;;  %v259_v43 = vld [vmem:[%s1185_s24 + $0x28] sm:$0xff]  ;;  %p935_p3 = pneg %p934_p1  ;;  %p940_p7 = scmp.lt.s32.totalorder %s938_s27, %s932_s16 }
  0x77   : > { %284 = vmax.xlane.f32.xlu0 %v283_v20  ;;  %v303_v38 = vmax.f32 %v302_v33, %v1278_v35  ;;  %v257_v40 = vld [vmem:[%s1185_s24 + $0x18] sm:$0xff]  ;;  %v260_v45 = vld [vmem:[%s1185_s24 + $0x30] sm:$0xff]  ;;  %v262_v48 = vld [vmem:[%s1185_s24 + $0x40] sm:$0xff]  ;;  %v346_v11 = vmul.f32 %v258_v41, %v1217_v9  ;;  %v347_v12 = vmul.f32 %v259_v43, %v1220_v10 }
  0x78   : > { %v307_v39 = vmax.f32 %v306_v36, %v1283_v37  ;;  %v314_v42 = vadd.f32 %v258_v41, %v257_v40  ;;  %v261_v46 = vld [vmem:[%s1185_s24 + $0x38] sm:$0xff]  ;;  %v263_v50 = vld [vmem:[%s1185_s24 + $0x48] sm:$0xff]  ;;  %v264_v51 = vld [vmem:[%s1185_s24 + $0x50] sm:$0xff]  ;;  %v345_v7 = vmul.f32 %v257_v40, %v1214_v8  ;;  %v348_v17 = vmul.f32 %v260_v45, %v1203_v4  ;;  %p941_p9 = por %p940_p7, %p939_p4 }
  0x79   : > { %292 = vmax.xlane.f32.xlu1 %v291_v24  ;;  %v318_v47 = vadd.f32 %v261_v46, %v260_v45  ;;  %v322_v52 = vadd.f32 %v264_v51, %v263_v50  ;;  %v265_v53 = vld [vmem:[%s1185_s24 + $0x58] sm:$0xff]  ;;  %v254_v55 = vld [vmem:[%s1185_s24] sm:$0xff]  ;;  %v255_v56 = vld [vmem:[%s1185_s24 + $0x8] sm:$0xff]  ;;  %v349_v20 = vmul.f32 %v261_v46, %v1206_v5  ;;  %v350_v24 = vmul.f32 %v262_v48, %v1209_v6 }
  0x7a   : > { %v315_v44 = vadd.f32 %v314_v42, %v259_v43  ;;  %v310_v57 = vadd.f32 %v255_v56, %v254_v55  ;;  %v256_v58 = vld [vmem:[%s1185_s24 + $0x10] sm:$0xff]  ;;  %v342_v60 = vmul.f32 %v254_v55, %v1192_v0  ;;  %v343_v61 = vmul.f32 %v255_v56, %v1195_v1  ;;  %p942_p10 = pnand %p941_p9, %p935_p3 }
  0x7b   : > { %296 = vmax.xlane.f32.xlu0 %v295_v32  ;;  %v319_v49 = vadd.f32 %v318_v47, %v262_v48  ;;  %v323_v54 = vadd.f32 %v322_v52, %v265_v53  ;;  %v344_v62 = vmul.f32 %v256_v58, %v1198_v2  ;;  %v370_v16 = vadd.f32 %v346_v11, %v345_v7 }
  0x7c   : > { %v311_v59 = vadd.f32 %v310_v57, %v256_v58  ;;  %v366_v63 = vadd.f32 %v343_v61, %v342_v60  ;;  %v374_v26 = vadd.f32 %v349_v20, %v348_v17  ;;  %v351_v33 = vmul.f32 %v263_v50, %v1226_v13 }
  0x7d   : > { %300 = vmax.xlane.f32.xlu1 %v299_v34  ;;  %v1309_v21 = vadd.f32 %v370_v16, %v347_v12  ;;  %v352_v34 = vmul.f32 %v264_v51, %v1229_v14  ;;  %v353_v36 = vmul.f32 %v265_v53, %v1232_v15 }
  0x7e   : > { %v1302_v3 = vadd.f32 %v366_v63, %v344_v62  ;;  %v1312_v32 = vadd.f32 %v374_v26, %v350_v24 }
  0x7f   : > { %304 = vmax.xlane.f32.xlu0 %v303_v38  ;;  %v378_v38 = vadd.f32 %v352_v34, %v351_v33 }
  0x81   : > { %308 = vmax.xlane.f32.xlu1 %v307_v39  ;;  %v1317_v39 = vadd.f32 %v378_v38, %v353_v36 }
  0x83   : > { %316 = vadd.xlane.f32.xlu0 %v315_v44 }
  0x85   : > { %312 = vadd.xlane.f32.xlu1 %v311_v59 }
  0x87   : > { %320 = vadd.xlane.f32.xlu0 %v319_v49 }
  0x8b   : > { %324 = vadd.xlane.f32.xlu0 %v323_v54 }
 0x100   : > { %v1319_v40 = vpop.xlane.xlu0 %280 }
 0x101   : > { %v398_v41 = vsub.f32 %v1192_v0, %v1319_v40  ;;  %v399_v42 = vsub.f32 %v1195_v1, %v1319_v40  ;;  %v400_v43 = vsub.f32 %v1198_v2, %v1319_v40 }
 0x102   : > { %v1327_v44 = vpop.xlane.xlu1 %288 }
 0x103   : > { %v404_v45 = vsub.f32 %v1203_v4, %v1327_v44  ;;  %v405_v46 = vsub.f32 %v1206_v5, %v1327_v44  ;;  %v406_v47 = vsub.f32 %v1209_v6, %v1327_v44  ;;  %v422_v48 = vmul.f32 1.442695, %v398_v41 }
 0x104   : > { %v424_v49 = vmul.f32 1.442695, %v399_v42  ;;  %v426_v0 = vmul.f32 1.442695, %v400_v43  ;;  %v1335_v1 = vpop.xlane.xlu0 %284 }
 0x105   : > { %v434_v50 = vmul.f32 1.442695, %v404_v45  ;;  %v436_v51 = vmul.f32 1.442695, %v405_v46  ;;  %796 = vpow2.f32 %v422_v48  ;;  %v401_v2 = vsub.f32 %v1214_v8, %v1335_v1 }
 0x106   : > { %v402_v4 = vsub.f32 %v1217_v9, %v1335_v1  ;;  %v403_v5 = vsub.f32 %v1220_v10, %v1335_v1  ;;  %v1343_v52 = vpop.xlane.xlu1 %292  ;;  %798 = vpow2.f32 %v424_v49  ;;  %v438_v6 = vmul.f32 1.442695, %v406_v47 }
 0x107   : > { %v407_v53 = vsub.f32 %v1226_v13, %v1343_v52  ;;  %800 = vpow2.f32 %v426_v0  ;;  %v428_v54 = vmul.f32 1.442695, %v401_v2  ;;  %v408_v55 = vsub.f32 %v1229_v14, %v1343_v52 }
 0x108   : > { %802 = vpow2.f32 %v434_v50  ;;  %v430_v8 = vmul.f32 1.442695, %v402_v4  ;;  %v409_v9 = vsub.f32 %v1232_v15, %v1343_v52  ;;  %v1351_v56 = vpop.xlane.xlu0 %296  ;;  %v432_v10 = vmul.f32 1.442695, %v403_v5 }
 0x109   : > { %804 = vpow2.f32 %v436_v51  ;;  %v410_v57 = vsub.f32 %v1238_v18, %v1351_v56  ;;  %v440_v13 = vmul.f32 1.442695, %v407_v53  ;;  %v411_v59 = vsub.f32 %v1241_v19, %v1351_v56 }
 0x10a   : > { %v1355_v58 = vpop.xlane.xlu1 %300  ;;  %806 = vpow2.f32 %v438_v6  ;;  %v442_v14 = vmul.f32 1.442695, %v408_v55  ;;  %v412_v60 = vsub.f32 %v1254_v25, %v1351_v56  ;;  %v444_v15 = vmul.f32 1.442695, %v409_v9 }
 0x10b   : > { %808 = vpow2.f32 %v428_v54  ;;  %v413_v61 = vsub.f32 %v1247_v22, %v1355_v58  ;;  %v446_v63 = vmul.f32 1.442695, %v410_v57  ;;  %v414_v7 = vsub.f32 %v1250_v23, %v1355_v58 }
 0x10c   : > { %810 = vpow2.f32 %v430_v8  ;;  %v1363_v62 = vpop.xlane.xlu0 %304  ;;  %v448_v11 = vmul.f32 1.442695, %v411_v59  ;;  %v415_v12 = vsub.f32 %v1265_v29, %v1355_v58  ;;  %v450_v17 = vmul.f32 1.442695, %v412_v60  ;;  %v1387_v59 = vld [vmem:[%s1185_s24 + $0x80] sm:$0xff] }
 0x10d   : > { %812 = vpow2.f32 %v432_v10  ;;  %v416_v20 = vsub.f32 %v1259_v27, %v1363_v62  ;;  %v452_v26 = vmul.f32 1.442695, %v413_v61  ;;  %v417_v33 = vsub.f32 %v1262_v28, %v1363_v62 }
 0x10e   : > { %814 = vpow2.f32 %v440_v13  ;;  %v1373_v34 = vpop.xlane.xlu1 %308  ;;  %v454_v38 = vmul.f32 1.442695, %v414_v7  ;;  %v456_v43 = vmul.f32 1.442695, %v415_v12  ;;  %v418_v45 = vsub.f32 %v1278_v35, %v1363_v62  ;;  %v1384_v13 = vld [vmem:[%s1185_s24 + $0x78] sm:$0xff]  ;;  %v267_v7 = vld [vmem:[%s1185_s24 + $0x68] sm:$0xff] }
 0x10f   : > { %v797_v16 = vpop.eup %796  ;;  %816 = vpow2.f32 %v442_v14  ;;  %v458_v47 = vmul.f32 1.442695, %v416_v20  ;;  %v419_v49 = vsub.f32 %v1268_v30, %v1373_v34  ;;  %v460_v50 = vmul.f32 1.442695, %v417_v33  ;;  %v271_v20 = vld [vmem:[%s1185_s24 + $0x88] sm:$0xff] }
 0x110   : > { %v799_v24 = vpop.eup %798  ;;  %818 = vpow2.f32 %v444_v15  ;;  %v420_v51 = vsub.f32 %v1271_v31, %v1373_v34  ;;  %v462_v6 = vmul.f32 1.442695, %v418_v45  ;;  %v421_v10 = vsub.f32 %v1283_v37, %v1373_v34 }
 0x111   : > { %v801_v36 = vpop.eup %800  ;;  %820 = vpow2.f32 %v446_v63  ;;  %v470_v41 = vadd.f32 %v799_v24, %v797_v16  ;;  %v464_v54 = vmul.f32 1.442695, %v419_v49  ;;  %v266_v63 = vld [vmem:[%s1185_s24 + $0x60] sm:$0xff]  ;;  %v330_v12 = vadd.f32 %v1387_v59, %v1384_v13 }
 0x112   : > { %v803_v42 = vpop.eup %802  ;;  %822 = vpow2.f32 %v448_v11  ;;  %v466_v57 = vmul.f32 1.442695, %v420_v51 }
 0x113   : > { %v805_v46 = vpop.eup %804  ;;  %824 = vpow2.f32 %v450_v17  ;;  %v471_v48 = vadd.f32 %v801_v36, %v470_v41  ;;  %v468_v17 = vmul.f32 1.442695, %v421_v10  ;;  %v326_v36 = vadd.f32 %v267_v7, %v266_v63  ;;  %v268_v41 = vld [vmem:[%s1185_s24 + $0x70] sm:$0xff] }
 0x114   : > { %v807_v0 = vpop.eup %806  ;;  %826 = vpow2.f32 %v452_v26  ;;  %v478_v2 = vadd.f32 %v805_v46, %v803_v42  ;;  %v331_v45 = vadd.f32 %v330_v12, %v271_v20 }
 0x115   : > { %v809_v4 = vpop.eup %808  ;;  %828 = vpow2.f32 %v454_v38  ;;  %472 = vadd.xlane.f32.xlu0 %v471_v48  ;;  %v327_v48 = vadd.f32 %v326_v36, %v268_v41 }
 0x116   : > { %v811_v5 = vpop.eup %810  ;;  %830 = vpow2.f32 %v456_v43  ;;  %v479_v55 = vadd.f32 %v807_v0, %v478_v2  ;;  %v272_v0 = vld [vmem:[%s1185_s24 + $0x90] sm:$0xff] }
 0x117   : > { %v813_v53 = vpop.eup %812  ;;  %832 = vpow2.f32 %v458_v47  ;;  %v474_v8 = vadd.f32 %v811_v5, %v809_v4 }
 0x118   : > { %v815_v9 = vpop.eup %814  ;;  %834 = vpow2.f32 %v460_v50  ;;  %v273_v50 = vld [vmem:[%s1185_s24 + $0x98] sm:$0xff] }
 0x119   : > { %v817_v14 = vpop.eup %816  ;;  %480 = vadd.xlane.f32.xlu0 %v479_v55  ;;  %v475_v60 = vadd.f32 %v813_v53, %v474_v8  ;;  %836 = vpow2.f32 %v462_v6  ;;  %v334_v4 = vadd.f32 %v273_v50, %v272_v0  ;;  %v274_v53 = vld [vmem:[%s1185_s24 + $0xa0] sm:$0xff]  ;;  %v275_v55 = vld [vmem:[%s1185_s24 + $0xa8] sm:$0xff]  ;;  %v276_v8 = vld [vmem:[%s1185_s24 + $0xb0] sm:$0xff]  ;;  %v361_v36 = vmul.f32 %v273_v50, %v1262_v28 }
 0x11a   : > { %v819_v15 = vpop.eup %818  ;;  %v482_v61 = vadd.f32 %v817_v14, %v815_v9  ;;  %838 = vpow2.f32 %v464_v54 }
 0x11b   : > { %v821_v11 = vpop.eup %820  ;;  %476 = vadd.xlane.f32.xlu1 %v475_v60  ;;  %840 = vpow2.f32 %v466_v57  ;;  %v335_v10 = vadd.f32 %v334_v4, %v274_v53  ;;  %v338_v57 = vadd.f32 %v276_v8, %v275_v55  ;;  %v277_v60 = vld [vmem:[%s1185_s24 + $0xb8] sm:$0xff] }
 0x11c   : > { %v823_v16 = vpop.eup %822  ;;  %v483_v26 = vadd.f32 %v819_v15, %v482_v61  ;;  %842 = vpow2.f32 %v468_v17  ;;  %v354_v61 = vmul.f32 %v266_v63, %v1238_v18  ;;  %v356_v17 = vmul.f32 %v268_v41, %v1254_v25 }
 0x11d   : > { %v825_v24 = vpop.eup %824  ;;  %v486_v33 = vadd.f32 %v823_v16, %v821_v11  ;;  %v355_v11 = vmul.f32 %v267_v7, %v1241_v19  ;;  %v339_v16 = vadd.f32 %v338_v57, %v277_v60  ;;  %v357_v19 = vmul.f32 %v1384_v13, %v1247_v22 }
 0x11e   : > { %v827_v38 = vpop.eup %826  ;;  %v358_v25 = vmul.f32 %v1387_v59, %v1250_v23  ;;  %v363_v7 = vmul.f32 %v275_v55, %v1268_v30  ;;  %v365_v22 = vmul.f32 %v277_v60, %v1283_v37  ;;  %v317_v59 = vpop.xlane.xlu0 %316  ;;  %v1431_v57 = vstv %s741_s20 }
 0x11f   : > { %v829_v42 = vpop.eup %828  ;;  %484 = vadd.xlane.f32.xlu1 %v483_v26  ;;  %v487_v43 = vadd.f32 %v825_v24, %v486_v33  ;;  %v382_v26 = vadd.f32 %v355_v11, %v354_v61  ;;  %v360_v33 = vmul.f32 %v272_v0, %v1259_v27  ;;  %v359_v27 = vmul.f32 %v271_v20, %v1265_v29  ;;  %v313_v29 = vpop.xlane.xlu1 %312 }
 0x120   : > { %v831_v46 = vpop.eup %830  ;;  %v490_v49 = vadd.f32 %v829_v42, %v827_v38  ;;  %v362_v38 = vmul.f32 %v274_v53, %v1278_v35  ;;  %v386_v28 = vadd.f32 %v358_v25, %v357_v19  ;;  %v364_v35 = vmul.f32 %v276_v8, %v1271_v31 }
 0x121   : > { %v833_v47 = vpop.eup %832  ;;  %488 = vadd.xlane.f32.xlu0 %v487_v43  ;;  %v390_v18 = vadd.f32 %v361_v36, %v360_v33 }
 0x122   : > { %v835_v51 = vpop.eup %834  ;;  %v491_v6 = vadd.f32 %v831_v46, %v490_v49  ;;  %v394_v13 = vadd.f32 %v364_v35, %v363_v7  ;;  %v1419_v41 = vpop.xlane.xlu0 %320 }
 0x123   : > { %332 = vadd.xlane.f32.xlu1 %v331_v45  ;;  %v837_v2 = vpop.eup %836  ;;  %v494_v54 = vadd.f32 %v835_v51, %v833_v47  ;;  %v391_v63 = vadd.f32 %v390_v18, %v362_v38 }
 0x124   : > { %v839_v5 = vpop.eup %838  ;;  %v395_v23 = vadd.f32 %v394_v13, %v365_v22 }
 0x125   : > { %328 = vadd.xlane.f32.xlu0 %v327_v48  ;;  %v841_v9 = vpop.eup %840  ;;  %v495_v14 = vadd.f32 %v837_v2, %v494_v54  ;;  %v566_v2 = vlaneseq }
 0x126   : > { %v498_v15 = vadd.f32 %v841_v9, %v839_v5  ;;  %v843_v12 = vpop.eup %842 }
 0x127   : > { %492 = vadd.xlane.f32.xlu1 %v491_v6 }
 0x128   : > { %v499_v24 = vadd.f32 %v843_v12, %v498_v15 }
 0x129   : > { %368 = vadd.xlane.f32.xlu0 %v1302_v3  ;;  %v383_v3 = vadd.f32 %v382_v26, %v356_v17 }
 0x12b   : > { %496 = vadd.xlane.f32.xlu1 %v495_v14 }
 0x12d   : > { %336 = vadd.xlane.f32.xlu0 %v335_v10 }
 0x12f   : > { %500 = vadd.xlane.f32.xlu1 %v499_v24 }
 0x131   : > { %340 = vadd.xlane.f32.xlu0 %v339_v16 }
 0x133   : > { %372 = vadd.xlane.f32.xlu1 %v1309_v21  ;;  %v387_v21 = vadd.f32 %v386_v28, %v359_v27 }
 0x135   : > { %384 = vadd.xlane.f32.xlu0 %v383_v3 }
 0x137   : > { %376 = vadd.xlane.f32.xlu1 %v1312_v32  ;;  %v1421_v32 = vpop.xlane.xlu0 %324 }
 0x139   : > { %392 = vadd.xlane.f32.xlu0 %v391_v63 }
 0x13b   : > { %380 = vadd.xlane.f32.xlu1 %v1317_v39 }
 0x13f   : > { %388 = vadd.xlane.f32.xlu1 %v387_v21 }
 0x143   : > { %396 = vadd.xlane.f32.xlu1 %v395_v23 }
 0x1a2   : > { %v473_v20 = vpop.xlane.xlu0 %472 }
 0x1a3   : > { %844 = vlog2.f32 %v473_v20 }
 0x1a6   : > { %v481_v31 = vpop.xlane.xlu0 %480 }
 0x1a8   : > { %v477_v30 = vpop.xlane.xlu1 %476 }
 0x1a9   : > { %846 = vlog2.f32 %v477_v30 }
 0x1aa   : > { %848 = vlog2.f32 %v481_v31 }
 0x1ac   : > { %v485_v42 = vpop.xlane.xlu1 %484 }
 0x1ad   : > { %v845_v43 = vpop.eup %844 }
 0x1ae   : > { %v489_v39 = vpop.xlane.xlu0 %488  ;;  %v503_v45 = vmul.f32 0.6931472, %v845_v43 }
 0x1af   : > { %850 = vlog2.f32 %v489_v39 }
 0x1b0   : > { %v1423_v37 = vpop.xlane.xlu1 %332  ;;  %852 = vlog2.f32 %v485_v42  ;;  %v518_v49 = vadd.f32 %v503_v45, %v1319_v40  ;;  %v1429_v40 = vshrl.u32 %v566_v2, 7 }
 0x1b2   : > { %v329_v46 = vpop.xlane.xlu0 %328  ;;  %v526_v53 = vmul.f32 %v518_v49, %v313_v29  ;;  %v568_v15 = vadd.s32 8, %v1429_v40  ;;  %v569_v61 = vadd.s32 16, %v1429_v40  ;;  %v577_v24 = vadd.s32 %v1431_v57, %v1429_v40 }
 0x1b3   : > { %v847_v47 = vpop.eup %846  ;;  %v570_v22 = vadd.s32 24, %v1429_v40 }
 0x1b4   : > { %v493_v48 = vpop.xlane.xlu1 %492  ;;  %v849_v50 = vpop.eup %848  ;;  %v505_v51 = vmul.f32 0.6931472, %v847_v47  ;;  %v578_v18 = vadd.s32 %v1431_v57, %v568_v15  ;;  %vm585_vm0 = vcmp.lt.s32.totalorder %v577_v24, 200 }
 0x1b5   : > { %854 = vlog2.f32 %v493_v48  ;;  %v507_v6 = vmul.f32 0.6931472, %v849_v50  ;;  %v580_v48 = vadd.s32 %v1431_v57, %v570_v22 }
 0x1b6   : > { %v369_v0 = vpop.xlane.xlu0 %368  ;;  %856 = vrcp.f32 %v313_v29  ;;  %v519_v8 = vadd.f32 %v505_v51, %v1335_v1  ;;  %vm586_vm1 = vcmp.lt.s32.totalorder %v578_v18, 200 }
 0x1b7   : > { %858 = vrcp.f32 %v317_v59  ;;  %v534_v14 = vsub.f32 %v369_v0, %v526_v53  ;;  %v520_v11 = vadd.f32 %v507_v6, %v1327_v44  ;;  %v579_v44 = vadd.s32 %v1431_v57, %v569_v61 }
 0x1b8   : > { %v497_v4 = vpop.xlane.xlu1 %496  ;;  %v527_v16 = vmul.f32 %v519_v8, %v317_v59  ;;  %v571_v59 = vadd.s32 32, %v1429_v40  ;;  %v572_v0 = vadd.s32 40, %v1429_v40  ;;  %v573_v53 = vadd.s32 48, %v1429_v40 }
 0x1b9   : > { %v851_v5 = vpop.eup %850  ;;  %860 = vlog2.f32 %v497_v4  ;;  %v528_v25 = vmul.f32 %v520_v11, %v1419_v41  ;;  %vm587_vm2 = vcmp.lt.s32.totalorder %v579_v44, 200  ;;  %vm588_vm3 = vcmp.lt.s32.totalorder %v580_v48, 200 }
 0x1ba   : > { %v337_v54 = vpop.xlane.xlu0 %336  ;;  %862 = vrcp.f32 %v1419_v41  ;;  %v511_v55 = vmul.f32 0.6931472, %v851_v5  ;;  %v853_v9 = vpop.eup %852  ;;  %v574_v61 = vadd.s32 56, %v1429_v40 }
 0x1bb   : > { %864 = vrcp.f32 %v329_v46  ;;  %v509_v1 = vmul.f32 0.6931472, %v853_v9 }
 0x1bc   : > { %v501_v10 = vpop.xlane.xlu1 %500  ;;  %v522_v12 = vadd.f32 %v511_v55, %v1351_v56 }
 0x1bd   : > { %866 = vlog2.f32 %v501_v10  ;;  %v521_v7 = vadd.f32 %v509_v1, %v1343_v52 }
 0x1be   : > { %v1433_v60 = vpop.xlane.xlu0 %340  ;;  %868 = vrcp.f32 %v1421_v32  ;;  %v530_v56 = vmul.f32 %v522_v12, %v329_v46 }
 0x1bf   : > { %v855_v17 = vpop.eup %854  ;;  %870 = vrcp.f32 %v337_v54  ;;  %v529_v39 = vmul.f32 %v521_v7, %v1421_v32  ;;  %v581_v32 = vadd.s32 %v1431_v57, %v571_v59 }
 0x1c0   : > { %v373_v26 = vpop.xlane.xlu1 %372  ;;  %v857_v33 = vpop.eup %856  ;;  %v513_v27 = vmul.f32 0.6931472, %v855_v17  ;;  %872 = vrcp.f32 %v1423_v37 }
 0x1c1   : > { %v535_v36 = vsub.f32 %v373_v26, %v527_v16  ;;  %v859_v3 = vpop.eup %858  ;;  %v550_v38 = vmul.f32 %v857_v33, %v534_v14  ;;  %874 = vrcp.f32 %v1433_v60  ;;  %v582_v14 = vadd.s32 %v1431_v57, %v572_v0 }
 0x1c2   : > { %v385_v19 = vpop.xlane.xlu0 %384  ;;  %v523_v45 = vadd.f32 %v513_v27, %v1355_v58  ;;  %vm589_vm4 = vcmp.lt.s32.totalorder %v581_v32, 200 }
 0x1c3   : > { %v861_v63 = vpop.eup %860  ;;  %v551_v28 = vmul.f32 %v859_v3, %v535_v36  ;;  %v538_v29 = vsub.f32 %v385_v19, %v530_v56  ;;  %v558_v30 = vsub.f32 0.0, %v550_v38  ;;  %vm590_vm5 = vcmp.lt.s32.totalorder %v582_v14, 200 }
 0x1c4   : > { %v515_v35 = vmul.f32 0.6931472, %v861_v63  ;;  %v377_v21 = vpop.xlane.xlu1 %376  ;;  %v863_v13 = vpop.eup %862  ;;  %v531_v9 = vmul.f32 %v523_v45, %v1423_v37  ;;  %v584_v38 = vadd.s32 %v1431_v57, %v574_v61 }
 0x1c5   : > { %v559_v23 = vsub.f32 0.0, %v551_v28  ;;  %v536_v20 = vsub.f32 %v377_v21, %v528_v25  ;;  %v865_v41 = vpop.eup %864  ;;  %v593_v6 = vsel %vm585_vm0, %v558_v30, 0.0 }
 0x1c6   : > { %v524_v31 = vadd.f32 %v515_v35, %v1363_v62  ;;  %v393_v43 = vpop.xlane.xlu0 %392  ;;  %v554_v51 = vmul.f32 %v865_v41, %v538_v29  ;;  %vm592_vm7 = vcmp.lt.s32.totalorder %v584_v38, 200 }
 0x1c7   : > { %v867_v52 = vpop.eup %866  ;;  %v552_v42 = vmul.f32 %v863_v13, %v536_v20  ;;  %v594_v62 = vsel %vm586_vm1, %v559_v23, 0.0 }
 0x1c8   : > { %v532_v46 = vmul.f32 %v524_v31, %v337_v54  ;;  %v517_v47 = vmul.f32 0.6931472, %v867_v52  ;;  %v381_v49 = vpop.xlane.xlu1 %380  ;;  %v869_v50 = vpop.eup %868  ;;  %v601_v10 = vadd.f32 %v594_v62, %v593_v6  ;;  %v562_v11 = vsub.f32 0.0, %v554_v51 }
 0x1c9   : > { %v560_v2 = vsub.f32 0.0, %v552_v42  ;;  %v537_v4 = vsub.f32 %v381_v49, %v529_v39  ;;  %v871_v5 = vpop.eup %870 }
 0x1ca   : > { %v540_v58 = vsub.f32 %v393_v43, %v532_v46  ;;  %v525_v54 = vadd.f32 %v517_v47, %v1373_v34  ;;  %v873_v17 = vpop.eup %872  ;;  %v583_v34 = vadd.s32 %v1431_v57, %v573_v53  ;;  %v597_v40 = vsel %vm589_vm4, %v562_v11, 0.0 }
 0x1cb   : > { %v595_v55 = vsel %vm587_vm2, %v560_v2, 0.0  ;;  %v553_v8 = vmul.f32 %v869_v50, %v537_v4  ;;  %v875_v36 = vpop.eup %874 }
 0x1cc   : > { %v389_v15 = vpop.xlane.xlu1 %388  ;;  %v556_v12 = vmul.f32 %v871_v5, %v540_v58  ;;  %v602_v24 = vadd.f32 %v601_v10, %v595_v55  ;;  %v533_v26 = vmul.f32 %v525_v54, %v1433_v60  ;;  %vm591_vm6 = vcmp.lt.s32.totalorder %v583_v34, 200 }
 0x1cd   : > { %v561_v1 = vsub.f32 0.0, %v553_v8  ;;  %v539_v16 = vsub.f32 %v389_v15, %v531_v9 }
 0x1ce   : > { %v564_v19 = vsub.f32 0.0, %v556_v12 }
 0x1cf   : > { %v596_v33 = vsel %vm588_vm3, %v561_v1, 0.0  ;;  %v555_v37 = vmul.f32 %v873_v17, %v539_v16 }
 0x1d0   : > { %v603_v3 = vadd.f32 %v602_v24, %v596_v33  ;;  %v397_v18 = vpop.xlane.xlu1 %396  ;;  %v599_v60 = vsel %vm591_vm6, %v564_v19, 0.0 }
 0x1d1   : > { %v563_v44 = vsub.f32 0.0, %v555_v37  ;;  %v541_v25 = vsub.f32 %v397_v18, %v533_v26 }
 0x1d2   : > { %v604_v63 = vadd.f32 %v603_v3, %v597_v40 }
 0x1d3   : > { %v598_v56 = vsel %vm590_vm5, %v563_v44, 0.0  ;;  %v557_v27 = vmul.f32 %v875_v36, %v541_v25 }
 0x1d4   : > { %v605_v28 = vadd.f32 %v604_v63, %v598_v56 }
 0x1d5   : > { %v565_v7 = vsub.f32 0.0, %v557_v27 }
 0x1d6   : > { %v606_v35 = vadd.f32 %v605_v28, %v599_v60 }
 0x1d7   : > { %v600_v21 = vsel %vm592_vm7, %v565_v7, 0.0 }
 0x1d8   : > { %v607_v22 = vadd.f32 %v606_v35, %v600_v21 }
 0x1da   : > { %v608_v57 = vrot.slane %v607_v22, 4 }
 0x1dc   : > { %v609_v13 = vadd.f32 %v608_v57, %v607_v22 }
 0x1de   : > { %v610_v23 = vrot.slane %v609_v13, 2 }
 0x1e0   : > { %v611_v59 = vadd.f32 %v610_v23, %v609_v13 }
 0x1e2   : > { %v612_v29 = vrot.slane %v611_v59, 1 }
 0x1e4   : > { %v613_v20 = vadd.f32 %v612_v29, %v611_v59 }
 0x1e6   : > { %614 = vst [vmem:[%s217_s30] sm:$0xff] %v613_v20 }
 0x1e7   : > { %945 = shalt.err (!%p942_p10)
}
 0x1e8   : > { %s946_s19 = scalar_lea.hbm %s1471_s8, 128  ;;  %s950_s26 = scalar_lea.hbm %s1516_s2, 512 }
 0x1e9   : > { %p947_p13 = scmp.ne.s32.totalorder %s1471_s8, %s946_s19  ;;  %p951_p2 = scmp.lt.u32.totalorder %s1471_s8, %s1516_s2 }
 0x1ea   : > { %p952_p12 = scmp.lt.u32.totalorder %s950_s26, %s946_s19  ;;  %p954_p6 = scmp.lt.u32.totalorder %s946_s19, %s1471_s8 }
 0x1eb   : > { %p948_p8 = pnand %p947_p13, %p1522_p5 }
 0x1ec   : > { %p953_p0 = por %p952_p12, %p951_p2 }
 0x1ed   : > { %p949_p11 = pneg %p948_p8 }
 0x1ee   : > { %p955_p1 = por %p954_p6, %p953_p0 }
 0x1f0   : > { %p956_p3 = pnand %p955_p1, %p949_p11 }
 0x1f2   : > { %959 = shalt.err (!%p956_p3)
}
 0x1f3   : > { %753 = dma.vmem_to_hbm [thread:$0]  (%p1522_p5), %s1473_s3, 128, %s1471_s8, %s616_s14  }
 0x1f4 PF: > { %p759_p4 = scmp.ge.s32.totalorder %s1002_s12, 2  ;;  %s641_s24 = sand.u32 1, %s990_s9  }
 0x1f5   : > { %p1523_p7 = scmp.ne.s32.totalorder %s1521_s22, 0  ;;  %s642_s20 = scalar_lea.sflag [#allocation4], %s641_s24 }
 0x1f7   : > { %p756_p9 = pnand %p759_p4, %p1523_p7 }
 0x1f9   : > { %985 = dma.done.wait (!%p756_p9), %s642_s20, 128  }
 0x1fa   : > { %987 = vsyncadd (!%p756_p9), %s642_s20, 4294967168  ;;  %p18_p10 = scmp.ge.s32.totalorder %s1051_s15, 6   ;;  %s1524_s9 = smov %s994_s10 }
 0x1fb   : > { %s1525_s10 = smov %s998_s11  ;;  %s1526_s11 = smov %s1063_s18 }
 0x1fc   : > { %s1527_s12 = smov %s1051_s15  ;;  %20 = sbr.rel (!%p18_p10) target bundleno = 7 (0x7), region = 86 }
 0x203   :  { %647 = vsyncpa [#allocation3], 1 }
 0x204   :  { %649 = vsyncpa [#allocation3 + $0x1], 1 }
 0x205   :  { %650 = vsyncpa [#allocation6], 1 }
 0x206   :  { %652 = vsyncpa [#allocation6 + $0x1], 1 }
 0x207   :  { %653 = vsyncpa [#allocation4], 1 }
 0x208   :  { %655 = vsyncpa [#allocation4 + $0x1], 1 }

</bundles_post_ra>
